<compile_context>
chip_gen: v7x
topology: tpu7x:2x2x1
jax: 0.10.0
libtpu: 0.0.40
codegen_flags: <defaults>
</compile_context>

<pallas_src>
import jax
import jax.numpy as jnp
from jax.experimental import pallas as pl
from jax.experimental.pallas import tpu as pltpu


def highway_kernel(x_ref, w_ref, b_ref, o_ref):
    """One grid step = one tile of rows; all layers unrolled inside.

    x_ref: (TN, D)      activation tile
    w_ref: (L, D, 3D)   fused [H | T | G] weights, (in, out) layout, VMEM-resident
    b_ref: (L, 1, 3D)   fused biases
    o_ref: (TN, D)      output tile
    """
    D = x_ref.shape[-1]
    L = w_ref.shape[0]

    x = x_ref[...].astype(jnp.float32)
    for l in range(L):                              # static unroll: L is small
        # Single fused MXU pass: (TN, D) @ (D, 3D) -> (TN, 3D), f32 accumulate.
        y = jnp.dot(x, w_ref[l], preferred_element_type=jnp.float32) + b_ref[l]
        h = jnp.maximum(y[:, :D], 0.0)              # relu(H x + bh)
        t = jax.nn.sigmoid(y[:, D:2 * D])           # sigmoid(T x + bt)
        g = y[:, 2 * D:]                            # G x + bg
        x = g + t * (h - g)                         # == t*h + (1-t)*g, 1 fewer VPU op
    o_ref[...] = x.astype(o_ref.dtype)


def highway_forward(x, wh, bh, wt, bt, wg, bg, *, row_tile=512):
    """x: (..., D).  wh/wt/wg: (L, D, D) already in (in, out) layout.  b*: (L, 1, D)."""
    orig_shape = x.shape
    D = orig_shape[-1]
    L = wh.shape[0]
    x2d = x.reshape(-1, D)
    N = x2d.shape[0]

    # Fuse the three projections into a single (D, 3D) matmul per layer.
    w = jnp.concatenate([wh, wt, wg], axis=-1)      # (L, D, 3D)
    b = jnp.concatenate([bh, bt, bg], axis=-1)      # (L, 1, 3D)

    # Row tiling: bounds VMEM (important on v7x's 64 MiB) and gives a parallel axis.
    TN = N if N <= row_tile else row_tile
    n_tiles = pl.cdiv(N, TN)
    N_pad = n_tiles * TN
    if N_pad != N:
        x2d = jnp.pad(x2d, ((0, N_pad - N), (0, 0)))

    xo_spec = pl.BlockSpec((TN, D), lambda i: (i, 0))
    w_spec = pl.BlockSpec((L, D, 3 * D), lambda i: (0, 0, 0))   # resident weights
    b_spec = pl.BlockSpec((L, 1, 3 * D), lambda i: (0, 0, 0))
    # TODO(synk): for large D, K-tile the (D,3D) weight block (extra grid axis +
    # f32 accumulator) and consider bf16 weights on v6e/v7x.

    out = pl.pallas_call(
        highway_kernel,
        out_shape=jax.ShapeDtypeStruct((N_pad, D), x.dtype),
        grid_spec=pltpu.PrefetchScalarGridSpec(
            num_scalar_prefetch=0,
            grid=(n_tiles,),
            in_specs=[xo_spec, w_spec, b_spec],
            out_specs=xo_spec,
        ),
        compiler_params=pltpu.CompilerParams(
            dimension_semantics=("parallel",)),
    )(x2d, w, b)

    if N_pad != N:
        out = out[:N]
    return out.reshape(orig_shape)


def highway_reference(x, wh, bh, wt, bt, wg, bg):
    """Pure-JAX reference mirroring the PyTorch forward."""
    orig_shape = x.shape
    D = orig_shape[-1]
    xf = x.reshape(-1, D).astype(jnp.float32)
    L = wh.shape[0]
    for l in range(L):
        t = jax.nn.sigmoid(xf @ wt[l] + bt[l])
        h = jax.nn.relu(xf @ wh[l] + bh[l])
        g = xf @ wg[l] + bg[l]
        xf = t * h + (1.0 - t) * g
    return xf.reshape(orig_shape).astype(x.dtype)


if __name__ == "__main__":
    emb_dim = 32
    num_layers = 2
    batch, seq = 2, 8   # x: (batch, seq, emb_dim), last dim is the feature dim

    key = jax.random.PRNGKey(0)
    keys = jax.random.split(key, 1 + 6 * num_layers)
    x = jax.random.normal(keys[0], (batch, seq, emb_dim), dtype=jnp.float32)

    # Deterministic parameter init (shapes from nn.Linear(emb_dim, emb_dim)).
    # PyTorch Linear weight is (out, in); we build directly in (in, out) layout.
    bound = 1.0 / (emb_dim ** 0.5)
    def init(k, shape):
        return jax.random.uniform(k, shape, jnp.float32, -bound, bound)

    wh = jnp.stack([init(keys[1 + 6 * l + 0], (emb_dim, emb_dim)) for l in range(num_layers)])
    bh = jnp.stack([init(keys[1 + 6 * l + 1], (1, emb_dim)) for l in range(num_layers)])
    wt = jnp.stack([init(keys[1 + 6 * l + 2], (emb_dim, emb_dim)) for l in range(num_layers)])
    bt = jnp.stack([init(keys[1 + 6 * l + 3], (1, emb_dim)) for l in range(num_layers)])
    wg = jnp.stack([init(keys[1 + 6 * l + 4], (emb_dim, emb_dim)) for l in range(num_layers)])
    bg = jnp.stack([init(keys[1 + 6 * l + 5], (1, emb_dim)) for l in range(num_layers)])

    out = highway_forward(x, wh, bh, wt, bt, wg, bg)
    out = jax.block_until_ready(out)

    ref = highway_reference(x, wh, bh, wt, bt, wg, bg)
    assert out.shape == x.shape and out.dtype == x.dtype
    assert jnp.allclose(out, ref, atol=1e-5, rtol=1e-5), "mismatch vs reference"

    print("KERNEL_OK")
</pallas_src>

<mosaic_0001>
module attributes {stable_mosaic.version = 11 : i64} {
  func.func @highway_kernel(%arg0: i32, %arg1: memref<16x32xf32, #tpu.memory_space<vmem>>, %arg2: memref<2x32x96xf32, #tpu.memory_space<vmem>>, %arg3: memref<2x1x96xf32, #tpu.memory_space<vmem>>, %arg4: memref<16x32xf32, #tpu.memory_space<vmem>>) attributes {dimension_semantics = [#tpu.dimension_semantics<parallel>], iteration_bounds = array<i64: 1>, scalar_prefetch = 0 : i64, scratch_operands = 0 : i64, tpu.core_type = #tpu.core_type<tc>, window_params = [{transform_indices = @transform_0, window_bounds = array<i64: 16, 32>}, {pipeline_mode = #tpu.pipeline_mode<synchronous>, transform_indices = @transform_1, window_bounds = array<i64: 2, 32, 96>}, {pipeline_mode = #tpu.pipeline_mode<synchronous>, transform_indices = @transform_2, window_bounds = array<i64: 2, 1, 96>}, {transform_indices = @transform_3, window_bounds = array<i64: 16, 32>}]} {
    %c0 = arith.constant 0 : index
    %c0_0 = arith.constant 0 : index
    %0 = vector.load %arg1[%c0, %c0_0] : memref<16x32xf32, #tpu.memory_space<vmem>>, vector<16x32xf32>
    %c0_1 = arith.constant 0 : index
    %c0_2 = arith.constant 0 : index
    %c0_3 = arith.constant 0 : index
    %1 = vector.load %arg2[%c0_1, %c0_2, %c0_3] : memref<2x32x96xf32, #tpu.memory_space<vmem>>, vector<1x32x96xf32>
    %2 = vector.shape_cast %1 : vector<1x32x96xf32> to vector<32x96xf32>
    %cst = arith.constant dense<0.000000e+00> : vector<16x96xf32>
    %3 = tpu.matmul %0, %2, %cst {dimension_numbers = #tpu.dot_dimension_numbers<[1], [0], [0], [1], [0, 0, 1, 1], [], []>} : vector<16x32xf32>, vector<32x96xf32>, vector<16x96xf32> -> vector<16x96xf32>
    %c0_4 = arith.constant 0 : index
    %c0_5 = arith.constant 0 : index
    %c0_6 = arith.constant 0 : index
    %4 = vector.load %arg3[%c0_4, %c0_5, %c0_6] : memref<2x1x96xf32, #tpu.memory_space<vmem>>, vector<1x1x96xf32>
    %5 = vector.shape_cast %4 : vector<1x1x96xf32> to vector<1x96xf32>
    %6 = vector.broadcast %5 : vector<1x96xf32> to vector<16x96xf32>
    %7 = arith.addf %3, %6 : vector<16x96xf32>
    %8 = vector.extract_strided_slice %7 {offsets = [0, 0], sizes = [16, 32], strides = [1, 1]} : vector<16x96xf32> to vector<16x32xf32>
    %cst_7 = arith.constant 0.000000e+00 : f32
    %9 = vector.broadcast %cst_7 : f32 to vector<16x32xf32>
    %10 = arith.maximumf %8, %9 : vector<16x32xf32>
    %11 = vector.extract_strided_slice %7 {offsets = [0, 32], sizes = [16, 32], strides = [1, 1]} : vector<16x96xf32> to vector<16x32xf32>
    %12 = arith.negf %11 : vector<16x32xf32>
    %13 = math.exp %12 : vector<16x32xf32>
    %cst_8 = arith.constant 1.000000e+00 : f32
    %14 = vector.broadcast %cst_8 : f32 to vector<16x32xf32>
    %15 = arith.addf %14, %13 : vector<16x32xf32>
    %16 = arith.divf %14, %15 : vector<16x32xf32>
    %17 = vector.extract_strided_slice %7 {offsets = [0, 64], sizes = [16, 32], strides = [1, 1]} : vector<16x96xf32> to vector<16x32xf32>
    %18 = arith.subf %10, %17 : vector<16x32xf32>
    %19 = arith.mulf %16, %18 : vector<16x32xf32>
    %20 = arith.addf %17, %19 : vector<16x32xf32>
    %c1 = arith.constant 1 : index
    %c0_9 = arith.constant 0 : index
    %c0_10 = arith.constant 0 : index
    %21 = vector.load %arg2[%c1, %c0_9, %c0_10] : memref<2x32x96xf32, #tpu.memory_space<vmem>>, vector<1x32x96xf32>
    %22 = vector.shape_cast %21 : vector<1x32x96xf32> to vector<32x96xf32>
    %cst_11 = arith.constant dense<0.000000e+00> : vector<16x96xf32>
    %23 = tpu.matmul %20, %22, %cst_11 {dimension_numbers = #tpu.dot_dimension_numbers<[1], [0], [0], [1], [0, 0, 1, 1], [], []>} : vector<16x32xf32>, vector<32x96xf32>, vector<16x96xf32> -> vector<16x96xf32>
    %c1_12 = arith.constant 1 : index
    %c0_13 = arith.constant 0 : index
    %c0_14 = arith.constant 0 : index
    %24 = vector.load %arg3[%c1_12, %c0_13, %c0_14] : memref<2x1x96xf32, #tpu.memory_space<vmem>>, vector<1x1x96xf32>
    %25 = vector.shape_cast %24 : vector<1x1x96xf32> to vector<1x96xf32>
    %26 = vector.broadcast %25 : vector<1x96xf32> to vector<16x96xf32>
    %27 = arith.addf %23, %26 : vector<16x96xf32>
    %28 = vector.extract_strided_slice %27 {offsets = [0, 0], sizes = [16, 32], strides = [1, 1]} : vector<16x96xf32> to vector<16x32xf32>
    %cst_15 = arith.constant 0.000000e+00 : f32
    %29 = vector.broadcast %cst_15 : f32 to vector<16x32xf32>
    %30 = arith.maximumf %28, %29 : vector<16x32xf32>
    %31 = vector.extract_strided_slice %27 {offsets = [0, 32], sizes = [16, 32], strides = [1, 1]} : vector<16x96xf32> to vector<16x32xf32>
    %32 = arith.negf %31 : vector<16x32xf32>
    %33 = math.exp %32 : vector<16x32xf32>
    %cst_16 = arith.constant 1.000000e+00 : f32
    %34 = vector.broadcast %cst_16 : f32 to vector<16x32xf32>
    %35 = arith.addf %34, %33 : vector<16x32xf32>
    %36 = arith.divf %34, %35 : vector<16x32xf32>
    %37 = vector.extract_strided_slice %27 {offsets = [0, 64], sizes = [16, 32], strides = [1, 1]} : vector<16x96xf32> to vector<16x32xf32>
    %38 = arith.subf %30, %37 : vector<16x32xf32>
    %39 = arith.mulf %36, %38 : vector<16x32xf32>
    %40 = arith.addf %37, %39 : vector<16x32xf32>
    %c0_17 = arith.constant 0 : index
    %c0_18 = arith.constant 0 : index
    %41 = vector.load %arg4[%c0_17, %c0_18] : memref<16x32xf32, #tpu.memory_space<vmem>>, vector<16x32xf32>
    tpu.vector_store %arg4[%c0_17, %c0_18], %40 {strides = array<i32>} : memref<16x32xf32, #tpu.memory_space<vmem>>, vector<16x32xf32>,
    return
  }
  func.func @transform_0(%arg0: i32) -> (i32, i32) {
    %c0_i32 = arith.constant 0 : i32
    %c0_i32_0 = arith.constant 0 : i32
    return %arg0, %c0_i32 : i32, i32
  }
  func.func @transform_1(%arg0: i32) -> (i32, i32, i32) {
    %c0_i32 = arith.constant 0 : i32
    %c0_i32_0 = arith.constant 0 : i32
    %c0_i32_1 = arith.constant 0 : i32
    %c0_i32_2 = arith.constant 0 : i32
    return %c0_i32, %c0_i32_0, %c0_i32_1 : i32, i32, i32
  }
  func.func @transform_2(%arg0: i32) -> (i32, i32, i32) {
    %c0_i32 = arith.constant 0 : i32
    %c0_i32_0 = arith.constant 0 : i32
    %c0_i32_1 = arith.constant 0 : i32
    %c0_i32_2 = arith.constant 0 : i32
    return %c0_i32, %c0_i32_0, %c0_i32_1 : i32, i32, i32
  }
  func.func @transform_3(%arg0: i32) -> (i32, i32) {
    %c0_i32 = arith.constant 0 : i32
    %c0_i32_0 = arith.constant 0 : i32
    return %arg0, %c0_i32 : i32, i32
  }
}

</mosaic_0001>

<bundles_post_ra>
// kernel: tpu_custom_call.1
= control target key start
LH: loop header
LB: loop body
LE: loop exit
PB: predicated region body
PF: predicated region fallthrough
CT: control target
= control target key end

     0   :  { %8 = vsyncpa [#allocation3], 0  ;;  %s608_s0 = inlined_call_operand.hbm [shape: f32[16,32], index: 0, kind: input, shape index: {}]   ;;  %s609_s1 = inlined_call_operand.hbm [shape: f32[2,32,96], index: 1, kind: input, shape index: {}]   ;;  %s610_s2 = inlined_call_operand.vmem [shape: f32[2,1,96], index: 2, kind: input, shape index: {}]   ;;  %s611_s3 = inlined_call_operand.hbm [shape: f32[16,32], index: 3, kind: output, shape index: {}]  }
   0x1   :  { %9 = vsyncpa [#allocation6], 0 }
   0x2   :  { %10 = vsyncpa [#allocation4], 0  ;;  %s508_s12 = smov [#allocation2]   ;;  %s436_s16 = scalar_lea.hbm %s608_s0, 256 }
   0x3   :  { %s16_s13 = sshll.u32 %s508_s12, 4  ;;  %p437_p0 = scmp.ne.s32.totalorder %s608_s0, %s436_s16  ;;  %s17_s13 = int_to_ptr.vmem [resolvable:$true] %s16_s13 }
   0x4   :  { %p440_p1 = scmp.lt.u32.totalorder %s436_s16, %s608_s0 }
   0x6   :  { %p442_p2 = pnand %p440_p1, %p437_p0 }
   0x8   :  { %445 = shalt.err (!%p442_p2)
}
   0x9   :  { %s446_s21 = scalar_lea.vmem %s17_s13, 256  ;;  %p451_p4 = scmp.lt.s32.totalorder %s17_s13, %s17_s13 }
   0xa   :  { %p447_p3 = scmp.ne.s32.totalorder %s17_s13, %s446_s21  ;;  %p452_p5 = scmp.lt.s32.totalorder %s446_s21, %s446_s21 }
   0xc   :  { %p453_p6 = por %p452_p5, %p451_p4 }
   0xe   :  { %p454_p7 = pnand %p453_p6, %p447_p3 }
  0x10   :  { %457 = shalt.err (!%p454_p7)
}
  0x11   :  { %s509_s22 = smov 128   ;;  %s510_s23 = smov 8  }
  0x12   :  { %22 = dma.hbm_to_vmem [thread:$0]  %s608_s0, 256, %s17_s13, [#allocation3], %s509_s22, %s509_s22, %s510_s23  }
  0x13   :  { %s511_s26 = smov [#allocation5]   ;;  %s458_s30 = scalar_lea.hbm %s609_s1, 1024 }
  0x14   :  { %s28_s27 = sshll.u32 %s511_s26, 4  ;;  %p459_p8 = scmp.ne.s32.totalorder %s609_s1, %s458_s30  ;;  %s29_s27 = int_to_ptr.vmem [resolvable:$true] %s28_s27 }
  0x15   :  { %p462_p9 = scmp.lt.u32.totalorder %s458_s30, %s609_s1 }
  0x17   :  { %p464_p10 = pnand %p462_p9, %p459_p8 }
  0x19   :  { %467 = shalt.err (!%p464_p10)
}
  0x1a   :  { %s468_s8 = scalar_lea.vmem %s29_s27, 1024  ;;  %p473_p12 = scmp.lt.s32.totalorder %s29_s27, %s29_s27 }
  0x1b   :  { %p469_p11 = scmp.ne.s32.totalorder %s29_s27, %s468_s8  ;;  %p474_p13 = scmp.lt.s32.totalorder %s468_s8, %s468_s8 }
  0x1d   :  { %p475_p0 = por %p474_p13, %p473_p12 }
  0x1f   :  { %p476_p1 = pnand %p475_p0, %p469_p11 }
  0x21   :  { %479 = shalt.err (!%p476_p1)
}
  0x22   :  { %34 = dma.hbm_to_vmem [thread:$0]  %s609_s1, 1024, %s29_s27, [#allocation6], %s509_s22, %s509_s22, %s510_s23  }
  0x23   :  { %502 = dma.done.wait [#allocation3], 256  }
  0x24   :  { %503 = vsyncadd [#allocation3], 4294967040 }
  0x25   :  { %504 = dma.done.wait [#allocation6], 1024  }
  0x26   :  { %505 = vsyncadd [#allocation6], 4294966272  ;;  %vm56_vm0 = vcmask 261120   ;;  %v45_v0 = vld [vmem:[#allocation5] sm:$0xff]  ;;  %v46_v1 = vld [vmem:[#allocation5 + $0x8] sm:$0xff]  ;;  %s512_s11 = smov 64  }
  0x27   :  { %v47_v2 = vld [vmem:[#allocation5 + $0x10] sm:$0xff]  ;;  %v397_v3 = vpack.c.bf16 %v46_v1, %v45_v0  ;;  %v48_v4 = vld [vmem:[#allocation5 + $0x18] sm:$0xff]  ;;  %s513_s12 = smov 32   ;;  %v183_v25 = vld [vmem:[#allocation5 + $0x20] sm:$0xff] }
  0x28   :  { %v43_v5 = vld [vmem:[#allocation2] sm:$0xff]  ;;  %v401_v6 = vpack.c.bf16 %v48_v4, %v47_v2  ;;  %v44_v7 = vld [vmem:[#allocation2 + $0x8] sm:$0xff]  ;;  %v184_v26 = vld [vmem:[#allocation5 + $0x28] sm:$0xff] }
  0x29   :  { %383 = vmatprep.mubr.msk.f32.mxu0 %vm56_vm0, %v43_v5  ;;  %398 = vmatprep.subr.bf16.mxu0 %v397_v3  ;;  %v352_v8 = vld [vmem:[%s610_s2] ss:$0 sm:$0xff]  ;;  %v405_v27 = vpack.c.bf16 %v184_v26, %v183_v25  ;;  %v186_v35 = vld [vmem:[#allocation5 + $0x38] sm:$0xff]  ;;  %v358_v43 = vld [vmem:[%s610_s2 + $0x1] ss:$0 sm:$0xff]  ;;  %s514_s2 = smov [#allocation7]  }
  0x2a   :  { %400 = vmatpush3.bf16.msra.mxu0 %v397_v3  ;;  %v185_v34 = vld [vmem:[#allocation5 + $0x30] sm:$0xff]  ;;  %s339_s15 = sshll.u32 %s514_s2, 4  ;;  %s340_s15 = int_to_ptr.vmem [resolvable:$true] %s339_s15 }
  0x2b   :  { %402 = vmatprep.subr.bf16.mxu0 %v401_v6  ;;  %406 = vmatprep.subr.bf16.mxu1 %v405_v27  ;;  %v409_v36 = vpack.c.bf16 %v186_v35, %v185_v34  ;;  %s480_s16 = scalar_lea.vmem %s340_s15, 256  ;;  %p485_p3 = scmp.lt.s32.totalorder %s340_s15, %s340_s15 }
  0x2c   :  { %408 = vmatpush3.bf16.msra.mxu1 %v405_v27  ;;  %p481_p2 = scmp.ne.s32.totalorder %s340_s15, %s480_s16  ;;  %p486_p4 = scmp.lt.s32.totalorder %s480_s16, %s480_s16 }
  0x2d   :  { %410 = vmatprep.subr.bf16.mxu1 %v409_v36 }
  0x2e   :  { %404 = vmatpush3.bf16.msra.mxu0 %v401_v6  ;;  %p487_p5 = por %p486_p4, %p485_p3 }
  0x30   :  { %412 = vmatpush3.bf16.msra.mxu1 %v409_v36  ;;  %p488_p6 = pnand %p487_p5, %p481_p2 }
  0x31   :  { %384 = vmatmul.mubr.msk.f32.vlgmr.msra.gmra.mrb[0].mxu0 %vm56_vm0, %v44_v7 }
 0x104   :  { %v385_v9 = vpop.f32.mrb[0].mxu0 }
 0x105   :  { %v129_v10 = vpop.f32.mrb[1].mxu0  ;;  %v135_v12 = vadd.f32 %v385_v9, %v352_v8 }
 0x106   :  { %v130_v11 = vadd.f32 %v352_v8, %v129_v10 }
 0x107   :  { %v139_v16 = vmax.f32 %v135_v12, 0.0  ;;  %v356_v20 = vmul.f32 -1.442695, %v135_v12 }
 0x108   :  { %154 = vrot.lane.b32.xlu0 %v130_v11, %s512_s11  ;;  %v138_v13 = vmax.f32 %v130_v11, 0.0  ;;  %v355_v19 = vmul.f32 -1.442695, %v130_v11 }
 0x10a   :  { %420 = vpow2.f32 %v355_v19 }
 0x10b   :  { %422 = vpow2.f32 %v356_v20 }
 0x10c   :  { %156 = vrot.lane.b32.xlu0 %v135_v12, %s512_s11 }
 0x114   :  { %v421_v21 = vpop.eup %420 }
 0x115   :  { %v146_v22 = vadd.f32 1.0, %v421_v21  ;;  %v423_v23 = vpop.eup %422 }
 0x116   :  { %v147_v24 = vadd.f32 1.0, %v423_v23 }
 0x117   :  { %424 = vrcp.f32 %v146_v22 }
 0x118   :  { %426 = vrcp.f32 %v147_v24 }
 0x121   :  { %v425_v28 = vpop.eup %424 }
 0x122   :  { %v427_v31 = vpop.eup %426 }
 0x17a   :  { %v155_v14 = vpop.permute.xlu0 %154 }
 0x17b   :  { %v160_v15 = vsub.f32 %v138_v13, %v155_v14 }
 0x17d   :  { %164 = vrot.lane.b32.xlu1 %v160_v15, %s513_s12 }
 0x17e   :  { %v157_v17 = vpop.permute.xlu0 %156 }
 0x17f   :  { %v161_v18 = vsub.f32 %v139_v16, %v157_v17 }
 0x181   :  { %166 = vrot.lane.b32.xlu1 %v161_v18, %s513_s12 }
 0x1ef   :  { %v165_v29 = vpop.permute.xlu1 %164 }
 0x1f0   :  { %v170_v30 = vmul.f32 %v425_v28, %v165_v29 }
 0x1f2   :  { %174 = vrot.lane.b32.xlu0 %v170_v30, %s513_s12 }
 0x1f3   :  { %v167_v32 = vpop.permute.xlu1 %166 }
 0x1f4   :  { %v171_v33 = vmul.f32 %v427_v31, %v167_v32 }
 0x1f6   :  { %176 = vrot.lane.b32.xlu1 %v171_v33, %s513_s12 }
 0x264   :  { %v175_v37 = vpop.permute.xlu0 %174 }
 0x265   :  { %v180_v38 = vadd.f32 %v175_v37, %v130_v11 }
 0x267   :  { %197 = vrot.lane.b32.xlu0 %v180_v38, %s512_s11 }
 0x268   :  { %v177_v39 = vpop.permute.xlu1 %176 }
 0x269   :  { %v181_v40 = vadd.f32 %v177_v39, %v135_v12 }
 0x26b   :  { %199 = vrot.lane.b32.xlu1 %v181_v40, %s512_s11 }
 0x2d9   :  { %v198_v41 = vpop.permute.xlu0 %197 }
 0x2da   :  { %394 = vmatprep.mubr.msk.f32.mxu1 %vm56_vm0, %v198_v41 }
 0x2dd   :  { %v200_v42 = vpop.permute.xlu1 %199 }
 0x2de   :  { %395 = vmatmul.mubr.msk.f32.vlgmr.msra.gmra.mrb[0].mxu1 %vm56_vm0, %v200_v42 }
 0x3b1   :  { %v396_v44 = vpop.f32.mrb[0].mxu1 }
 0x3b2   :  { %v277_v45 = vadd.f32 %v396_v44, %v358_v43  ;;  %v271_v46 = vpop.f32.mrb[1].mxu1 }
 0x3b3   :  { %v272_v47 = vadd.f32 %v358_v43, %v271_v46 }
 0x3b4   :  { %298 = vrot.lane.b32.xlu1 %v277_v45, %s512_s11  ;;  %v281_v48 = vmax.f32 %v277_v45, 0.0  ;;  %v362_v54 = vmul.f32 -1.442695, %v277_v45 }
 0x3b5   :  { %296 = vrot.lane.b32.xlu0 %v272_v47, %s512_s11  ;;  %v280_v50 = vmax.f32 %v272_v47, 0.0  ;;  %v361_v55 = vmul.f32 -1.442695, %v272_v47 }
 0x3b6   :  { %428 = vpow2.f32 %v362_v54 }
 0x3b7   :  { %430 = vpow2.f32 %v361_v55 }
 0x3c0   :  { %v429_v56 = vpop.eup %428 }
 0x3c1   :  { %v431_v57 = vpop.eup %430  ;;  %v289_v58 = vadd.f32 1.0, %v429_v56 }
 0x3c2   :  { %v288_v59 = vadd.f32 1.0, %v431_v57 }
 0x3c3   :  { %432 = vrcp.f32 %v289_v58 }
 0x3c4   :  { %434 = vrcp.f32 %v288_v59 }
 0x3cd   :  { %v433_v60 = vpop.eup %432 }
 0x3ce   :  { %v435_v62 = vpop.eup %434 }
 0x426   :  { %v299_v49 = vpop.permute.xlu1 %298 }
 0x427   :  { %v303_v51 = vsub.f32 %v281_v48, %v299_v49  ;;  %v297_v52 = vpop.permute.xlu0 %296 }
 0x428   :  { %v302_v53 = vsub.f32 %v280_v50, %v297_v52 }
 0x429   :  { %308 = vrot.lane.b32.xlu1 %v303_v51, %s513_s12 }
 0x42a   :  { %306 = vrot.lane.b32.xlu0 %v302_v53, %s513_s12 }
 0x49b   :  { %v309_v61 = vpop.permute.xlu1 %308 }
 0x49c   :  { %v313_v63 = vmul.f32 %v433_v60, %v309_v61  ;;  %v307_v0 = vpop.permute.xlu0 %306 }
 0x49d   :  { %v312_v1 = vmul.f32 %v435_v62, %v307_v0 }
 0x49e   :  { %318 = vrot.lane.b32.xlu1 %v313_v63, %s513_s12 }
 0x49f   :  { %316 = vrot.lane.b32.xlu0 %v312_v1, %s513_s12 }
 0x510   :  { %v319_v2 = vpop.permute.xlu1 %318 }
 0x511   :  { %v323_v3 = vadd.f32 %v319_v2, %v277_v45  ;;  %v317_v4 = vpop.permute.xlu0 %316 }
 0x512   :  { %v322_v5 = vadd.f32 %v317_v4, %v272_v47 }
 0x513   :  { %328 = vrot.lane.b32.xlu1 %v323_v3, %s512_s11 }
 0x514   :  { %326 = vrot.lane.b32.xlu0 %v322_v5, %s512_s11 }
 0x585   :  { %v329_v6 = vpop.permute.xlu1 %328 }
 0x586   :  { %333 = vst.msk [vmem:[#allocation7 + $0x8] sm:$0xff] %vm56_vm0, %v329_v6  ;;  %v327_v7 = vpop.permute.xlu0 %326 }
 0x587   :  { %332 = vst.msk [vmem:[#allocation7] sm:$0xff] %vm56_vm0, %v327_v7 }
 0x588   :  { %491 = shalt.err (!%p488_p6)
}
 0x589   :  { %s492_s19 = scalar_lea.hbm %s611_s3, 256 }
 0x58a   :  { %p493_p7 = scmp.ne.s32.totalorder %s611_s3, %s492_s19  ;;  %p496_p8 = scmp.lt.u32.totalorder %s492_s19, %s611_s3 }
 0x58c   :  { %p498_p9 = pnand %p496_p8, %p493_p7 }
 0x58e   :  { %501 = shalt.err (!%p498_p9)
}
 0x58f   :  { %345 = dma.vmem_to_hbm [thread:$0]  %s340_s15, 256, %s611_s3, [#allocation4], %s509_s22, %s509_s22, %s510_s23  }
 0x590   :  { %506 = dma.done.wait [#allocation4], 256  }
 0x591   :  { %507 = vsyncadd [#allocation4], 4294967040 }
 0x592   :  { %349 = vsyncpa [#allocation3], 1 }
 0x593   :  { %350 = vsyncpa [#allocation6], 1 }
 0x594   :  { %351 = vsyncpa [#allocation4], 1 }

</bundles_post_ra>
